<compile_context>
chip_gen: v7x
topology: tpu7x:2x2x1
jax: 0.10.0
libtpu: 0.0.40
codegen_flags: <defaults>
</compile_context>

<pallas_src>
import functools
import math

import jax
import jax.numpy as jnp
from jax.experimental import pallas as pl
from jax.experimental.pallas import tpu as pltpu


def _freq_norm_kernel(x_ref, o_ref, *, min_freq, min_band_hz):
    """x_ref: [N, 2] (col 0 = low, col 1 = high). o_ref: [N, 2] (center, theta)."""
    lower = jnp.float32(min_freq)
    upper = jnp.float32(0.5)

    # Native [N, 2] layout: 1-wide masked lane column accesses. At small N this
    # is free; only at N >> 1e5 would a lane-dense [2, N] layout matter.
    low = x_ref[:, 0:1]    # [N, 1]
    high = x_ref[:, 1:2]   # [N, 1]

    clipped_lfreq = jnp.clip(low, lower, upper)
    band_hz = jnp.abs(high - low)
    clipped_hfreq = jnp.clip(low + jnp.float32(min_band_hz) + band_hz, lower, upper)

    bandwidth = clipped_hfreq - clipped_lfreq
    # sqrt(2 ln 2) / pi hoisted to a single f32 constant -> one divide per elem.
    # bandwidth == 0 (both cutoffs clip to the same bound) yields inf, exactly
    # like the PyTorch module.
    # (In a fused, VPU-bound variant: coeff * pl.reciprocal(bandwidth) moves
    #  the divide onto the EUP slot; irrelevant here — overhead bound.)
    coeff_over_pi = jnp.float32(math.sqrt(2.0 * math.log(2.0)) / math.pi)
    thetas = coeff_over_pi / bandwidth
    # (h + l)/2 * 2*pi == (h + l) * pi  (bit-exact in f32: /2 and *2 are exact).
    center_freqs = (clipped_hfreq + clipped_lfreq) * jnp.float32(math.pi)

    o_ref[:, 0:1] = center_freqs
    o_ref[:, 1:2] = thetas


def freq_norm_const(kernel_data, kernel_size, sample_rate):
    """Pallas equivalent of freqNorm_Const.forward.

    Args:
      kernel_data: float array of shape [N, 2] (low, high normalized freqs).
      kernel_size: unused by forward (kept for parity with the module __init__).
      sample_rate: sample rate in Hz (static Python number).
    Returns:
      float32 array of shape [N, 2]: [:, 0] center freq (radians), [:, 1] theta.
    """
    del kernel_size  # not used in the forward pass
    min_band_hz = 50.0 / (sample_rate / 2.0)
    min_freq = 30.0 / (sample_rate / 2.0)

    n, two = kernel_data.shape
    assert two == 2

    # No relayout: compute directly on the native [N, 2] storage.
    if kernel_data.dtype != jnp.float32:
        kernel_data = kernel_data.astype(jnp.float32)

    kernel = functools.partial(
        _freq_norm_kernel, min_freq=min_freq, min_band_hz=min_band_hz)

    # Gridless call: whole (tiny) array is a single full-extent VMEM block —
    # the minimal-overhead form of pallas_call. See header for large-N tiling.
    out = pl.pallas_call(
        kernel,
        out_shape=jax.ShapeDtypeStruct((n, 2), jnp.float32),
        in_specs=[pl.BlockSpec(memory_space=pltpu.MemorySpace.VMEM)],
        out_specs=pl.BlockSpec(memory_space=pltpu.MemorySpace.VMEM),
        cost_estimate=pl.CostEstimate(
            flops=10 * n, transcendentals=0, bytes_accessed=16 * n),
    )(kernel_data)

    return out


def _reference(kernel_data, sample_rate):
    """Pure-JAX reference mirroring the PyTorch forward exactly."""
    min_band_hz = 50.0 / (sample_rate / 2.0)
    min_freq = 30.0 / (sample_rate / 2.0)
    lower, upper = min_freq, 0.5
    low = kernel_data[:, 0]
    high = kernel_data[:, 1]
    clipped_l = jnp.clip(low, lower, upper)
    band = jnp.abs(high - low)
    clipped_h = jnp.clip(low + min_band_hz + band, lower, upper)
    coeff = jnp.sqrt(2.0 * jnp.log(2.0))
    bw = clipped_h - clipped_l
    thetas = coeff / (bw * jnp.pi)
    center = (clipped_h + clipped_l) / 2.0 * (2.0 * jnp.pi)
    return jnp.stack([center, thetas], axis=1)


if __name__ == "__main__":
    key = jax.random.PRNGKey(0)
    sample_rate = 16000
    kernel_size = 401          # only stored by the module, unused in forward
    n_filters = 16

    # Deterministic synthetic "learned" cutoff parameters in [0, 0.5].
    k1, k2 = jax.random.split(key)
    low = jax.random.uniform(k1, (n_filters,), minval=0.0, maxval=0.4)
    high = low + jax.random.uniform(k2, (n_filters,), minval=0.0, maxval=0.1)
    kernel_data = jnp.stack([low, high], axis=1).astype(jnp.float32)  # [N, 2]

    out = freq_norm_const(kernel_data, kernel_size, sample_rate)
    out = jax.block_until_ready(out)

    ref = _reference(kernel_data, sample_rate)
    assert out.shape == (n_filters, 2)
    assert jnp.allclose(out, ref, rtol=1e-5, atol=1e-5), (out, ref)

    print("KERNEL_OK")
</pallas_src>

<mosaic_0001>
module attributes {stable_mosaic.version = 11 : i64} {
  func.func @_freq_norm_kernel(%arg0: memref<16x2xf32, #tpu.memory_space<vmem>>, %arg1: memref<16x2xf32, #tpu.memory_space<vmem>>) attributes {dimension_semantics = [], scalar_prefetch = 0 : i64, scratch_operands = 0 : i64, tpu.core_type = #tpu.core_type<tc>} {
    %c0 = arith.constant 0 : index
    %c0_0 = arith.constant 0 : index
    %0 = vector.load %arg0[%c0, %c0_0] : memref<16x2xf32, #tpu.memory_space<vmem>>, vector<16x1xf32>
    %c0_1 = arith.constant 0 : index
    %c1 = arith.constant 1 : index
    %1 = vector.load %arg0[%c0_1, %c1] : memref<16x2xf32, #tpu.memory_space<vmem>>, vector<16x1xf32>
    %cst = arith.constant 3.750000e-03 : f32
    %cst_2 = arith.constant 5.000000e-01 : f32
    %2 = vector.broadcast %cst : f32 to vector<16x1xf32>
    %3 = arith.maximumf %2, %0 : vector<16x1xf32>
    %4 = vector.broadcast %cst_2 : f32 to vector<16x1xf32>
    %5 = arith.minimumf %4, %3 : vector<16x1xf32>
    %6 = arith.subf %1, %0 : vector<16x1xf32>
    %7 = math.absf %6 : vector<16x1xf32>
    %cst_3 = arith.constant 6.250000e-03 : f32
    %8 = vector.broadcast %cst_3 : f32 to vector<16x1xf32>
    %9 = arith.addf %0, %8 : vector<16x1xf32>
    %10 = arith.addf %9, %7 : vector<16x1xf32>
    %cst_4 = arith.constant 3.750000e-03 : f32
    %cst_5 = arith.constant 5.000000e-01 : f32
    %11 = vector.broadcast %cst_4 : f32 to vector<16x1xf32>
    %12 = arith.maximumf %11, %10 : vector<16x1xf32>
    %13 = vector.broadcast %cst_5 : f32 to vector<16x1xf32>
    %14 = arith.minimumf %13, %12 : vector<16x1xf32>
    %15 = arith.subf %14, %5 : vector<16x1xf32>
    %cst_6 = arith.constant 0.374781251 : f32
    %16 = vector.broadcast %cst_6 : f32 to vector<16x1xf32>
    %17 = arith.divf %16, %15 : vector<16x1xf32>
    %18 = arith.addf %14, %5 : vector<16x1xf32>
    %cst_7 = arith.constant 3.14159274 : f32
    %19 = vector.broadcast %cst_7 : f32 to vector<16x1xf32>
    %20 = arith.mulf %18, %19 : vector<16x1xf32>
    %c0_8 = arith.constant 0 : index
    %c0_9 = arith.constant 0 : index
    %21 = vector.load %arg1[%c0_8, %c0_9] : memref<16x2xf32, #tpu.memory_space<vmem>>, vector<16x1xf32>
    tpu.vector_store %arg1[%c0_8, %c0_9], %20 {strides = array<i32>} : memref<16x2xf32, #tpu.memory_space<vmem>>, vector<16x1xf32>,
    %c0_10 = arith.constant 0 : index
    %c1_11 = arith.constant 1 : index
    %22 = vector.load %arg1[%c0_10, %c1_11] : memref<16x2xf32, #tpu.memory_space<vmem>>, vector<16x1xf32>
    tpu.vector_store %arg1[%c0_10, %c1_11], %17 {strides = array<i32>} : memref<16x2xf32, #tpu.memory_space<vmem>>, vector<16x1xf32>,
    return
  }
}

</mosaic_0001>

<bundles_post_ra>
// kernel: tpu_custom_call.1
= control target key start
LH: loop header
LB: loop body
LE: loop exit
PB: predicated region body
PF: predicated region fallthrough
CT: control target
= control target key end

     0   :  { %s76_s8 = smov 1   ;;  %s77_s11 = smov 127   ;;  %vm52_vm0 = vcmask 7168   ;;  %vm63_vm1 = vcmask 15368   ;;  %s110_s0 = inlined_call_operand.vmem [shape: f32[16,2], index: 0, kind: input, shape index: {}]   ;;  %s111_s1 = inlined_call_operand.vmem [shape: f32[16,2], index: 1, kind: output, shape index: {}]  }
   0x1   :  { %v8_v0 = vld [vmem:[%s110_s0] sm:$0xff]  ;;  %v9_v1 = vld [vmem:[%s110_s0 + $0x8] sm:$0xff] }
   0x2   :  { %16 = vrot.lane.b32.xlu0 %v8_v0, %s76_s8  ;;  %v26_v8 = vadd.f32 0.00625, %v8_v0  ;;  %v10_v9 = vmax.f32 %v8_v0, 0.00375  ;;  %v27_v12 = vadd.f32 0.00625, %v9_v1 }
   0x3   :  { %v11_v15 = vmax.f32 %v9_v1, 0.00375 }
   0x4   :  { %v12_v13 = vmin.f32 %v10_v9, 0.5 }
   0x5   :  { %v13_v21 = vmin.f32 %v11_v15, 0.5 }
   0x6   :  { %18 = vrot.lane.b32.xlu0 %v9_v1, %s76_s8 }
  0x74   :  { %v17_v2 = vpop.permute.xlu0 %16 }
  0x75   :  { %v22_v3 = vsub.f32 %v8_v0, %v17_v2 }
  0x77   :  { %v24_v4 = vand.u32 2147483647, %v22_v3 }
  0x78   :  { %v19_v5 = vpop.permute.xlu0 %18 }
  0x79   :  { %v23_v6 = vsub.f32 %v9_v1, %v19_v5  ;;  %30 = vrot.lane.b32.xlu1 %v24_v4, %s77_s11 }
  0x7b   :  { %v25_v7 = vand.u32 2147483647, %v23_v6 }
  0x7d   :  { %32 = vrot.lane.b32.xlu1 %v25_v7, %s77_s11 }
  0xeb   :  { %v31_v10 = vpop.permute.xlu1 %30 }
  0xec   :  { %v36_v11 = vadd.f32 %v31_v10, %v26_v8 }
  0xee   :  { %v38_v14 = vmax.f32 %v36_v11, 0.00375 }
  0xef   :  { %v33_v16 = vpop.permute.xlu1 %32 }
  0xf0   :  { %v40_v17 = vmin.f32 %v38_v14, 0.5  ;;  %v37_v18 = vadd.f32 %v33_v16, %v27_v12 }
  0xf2   :  { %v42_v19 = vsub.f32 %v40_v17, %v12_v13  ;;  %v48_v20 = vadd.f32 %v40_v17, %v12_v13  ;;  %v39_v22 = vmax.f32 %v37_v18, 0.00375 }
  0xf4   :  { %72 = vrcp.f32 %v42_v19  ;;  %v50_v23 = vmul.f32 3.1415927, %v48_v20  ;;  %v41_v24 = vmin.f32 %v39_v22, 0.5 }
  0xf6   :  { %v43_v25 = vsub.f32 %v41_v24, %v13_v21  ;;  %v49_v26 = vadd.f32 %v41_v24, %v13_v21  ;;  %53 = vst.msk [vmem:[%s111_s1] sm:$0xff] %vm52_vm0, %v50_v23 }
  0xf8   :  { %74 = vrcp.f32 %v43_v25  ;;  %v51_v27 = vmul.f32 3.1415927, %v49_v26 }
  0xfa   :  { %54 = vst.msk [vmem:[%s111_s1 + $0x8] sm:$0xff] %vm52_vm0, %v51_v27 }
  0xfe   :  { %v73_v28 = vpop.eup %72 }
  0xff   :  { %v45_v29 = vmul.f32 0.37478125, %v73_v28 }
 0x101   :  { %57 = vrot.lane.b32.xlu0 %v45_v29, %s76_s8 }
 0x102   :  { %v75_v30 = vpop.eup %74 }
 0x103   :  { %v47_v31 = vmul.f32 0.37478125, %v75_v30 }
 0x105   :  { %59 = vrot.lane.b32.xlu1 %v47_v31, %s76_s8 }
 0x173   :  { %v58_v32 = vpop.permute.xlu0 %57 }
 0x174   :  { %64 = vst.msk [vmem:[%s111_s1] sm:$0xff] %vm63_vm1, %v58_v32 }
 0x177   :  { %v60_v33 = vpop.permute.xlu1 %59 }
 0x178   :  { %65 = vst.msk [vmem:[%s111_s1 + $0x8] sm:$0xff] %vm63_vm1, %v60_v33 }

</bundles_post_ra>
